<compile_context>
chip_gen: v5e
topology: v5e:2x2
jax: 0.10.0
libtpu: 0.0.40
codegen_flags: <defaults>
</compile_context>

<pallas_src>
import functools

import jax
import jax.numpy as jnp
from jax.experimental import pallas as pl
from jax.experimental.pallas import tpu as pltpu


def _tanh_kernel(x_ref, o_ref, *, upcast_f32):
    x = x_ref[...]
    if (upcast_f32
            and jnp.issubdtype(x_ref.dtype, jnp.floating)
            and x_ref.dtype != jnp.float32):
        # v5e only: VPU/EUP have no native bf16/f16 path -> compute tanh in
        # f32 on the EUP, single cast back on store.
        o_ref[...] = jnp.tanh(x.astype(jnp.float32)).astype(o_ref.dtype)
    else:
        # v6e/v7x (and f32 everywhere): native-precision single EUP tanh,
        # no f32 round trip, no extra VALU cast work.
        o_ref[...] = jnp.tanh(x)


def _round_up(a, b):
    return ((a + b - 1) // b) * b


def _chip_config():
    """Best-effort TPU-generation detection (perf tuning only; safe defaults)."""
    try:
        kind = jax.devices()[0].device_kind.lower()
    except Exception:  # pragma: no cover - detection is purely advisory
        kind = ""
    is_v5e = ("v5 lite" in kind) or ("v5e" in kind) or ("v5litepod" in kind)
    is_v6 = "v6" in kind
    is_v7 = "v7" in kind
    # Chips with 2 TensorCores visible to one program (megacore).
    multi_tc = is_v7 or ("v4" in kind) or ("v5p" in kind) or ("v5 p" in kind)
    if is_v7:
        # 64 MiB VMEM per TC: keep ~4 MiB tiles / 32 MiB scoped limit.
        tile_bytes, vmem_limit = 4 << 20, 32 << 20
    elif is_v5e or is_v6:
        # 128 MiB VMEM: slightly larger tiles -> fewer grid steps (~1-2%).
        tile_bytes, vmem_limit = 8 << 20, 64 << 20
    else:
        # Unknown chip: conservative sizing, safe on every generation.
        tile_bytes, vmem_limit = 4 << 20, 32 << 20
    return {
        "upcast_f32": is_v5e,          # only v5e needs the f32 round trip
        "num_cores": 2 if multi_tc else 1,
        "tile_bytes": tile_bytes,
        "vmem_limit": vmem_limit,
    }


def _tanh_2d(x2d, cfg):
    """Elementwise tanh over a lane-dense (rows, n_cols) slab."""
    rows, n_cols = x2d.shape
    dtype = x2d.dtype
    itemsize = jnp.dtype(dtype).itemsize
    # Packed sublane granularity: 8 for 4-byte, 16 for 2-byte, 32 for 1-byte.
    sub_mult = max(8, 32 // itemsize)

    max_tile_rows = max(
        sub_mult,
        (cfg["tile_bytes"] // (n_cols * itemsize)) // sub_mult * sub_mult,
    )

    if rows > max_tile_rows:
        tile_rows = max_tile_rows
    elif cfg["num_cores"] >= 2 and rows >= 2 * cfg["num_cores"] * sub_mult:
        # Megacore (v7x): aim for an even grid with >=2 steps per core so both
        # TensorCores get balanced work; tiles stay sublane-group aligned.
        n_steps = 2 * cfg["num_cores"]
        tile_rows = _round_up(pl.cdiv(rows, n_steps), sub_mult)
        t = tile_rows
        while t < rows and pl.cdiv(rows, t) % cfg["num_cores"] != 0:
            t += sub_mult
        if pl.cdiv(rows, t) % cfg["num_cores"] == 0:
            tile_rows = t
    else:
        # Single-TC chips (v5e/v6e) or tiny slabs: one grid step, no per-step
        # (~0.35 us) overhead.
        tile_rows = rows

    grid = (pl.cdiv(rows, tile_rows),)
    kernel = functools.partial(_tanh_kernel, upcast_f32=cfg["upcast_f32"])

    return pl.pallas_call(
        kernel,
        out_shape=jax.ShapeDtypeStruct((rows, n_cols), dtype),
        grid_spec=pltpu.PrefetchScalarGridSpec(
            num_scalar_prefetch=0,
            grid=grid,
            in_specs=[pl.BlockSpec((tile_rows, n_cols), lambda i: (i, 0))],
            out_specs=pl.BlockSpec((tile_rows, n_cols), lambda i: (i, 0)),
        ),
        compiler_params=pltpu.CompilerParams(
            dimension_semantics=("parallel",),
            vmem_limit_bytes=cfg["vmem_limit"],
        ),
        cost_estimate=pl.CostEstimate(
            flops=0,
            transcendentals=rows * n_cols,
            bytes_accessed=2 * rows * n_cols * itemsize,
        ),
    )(x2d)


def _tanh_small_1d(x1d, cfg):
    """Tiny (<2048 element) tail: single full-array block, no grid."""
    kernel = functools.partial(_tanh_kernel, upcast_f32=cfg["upcast_f32"])
    return pl.pallas_call(
        kernel,
        out_shape=jax.ShapeDtypeStruct(x1d.shape, x1d.dtype),
    )(x1d)


def tanh_forward(x):
    """Elementwise tanh via Pallas TPU kernels. Matches torch.Tensor.tanh()."""
    orig_shape = x.shape
    if not jnp.issubdtype(x.dtype, jnp.floating):
        # torch.tanh promotes integer/bool tensors to a floating result.
        x = x.astype(jnp.float32)

    total = int(x.size)
    if total == 0:
        return x.reshape(orig_shape)

    cfg = _chip_config()
    flat = x.reshape(-1)  # free row-major view

    # Fast path: numel is a multiple of 128 -> lane-dense 2D slab, no padding,
    # no extra HBM passes.
    n_cols = None
    for c in (2048, 4096, 8192, 1024, 512, 256, 128):
        if total % c == 0:
            n_cols = c
            break
    if n_cols is not None:
        return _tanh_2d(flat.reshape(total // n_cols, n_cols), cfg).reshape(orig_shape)

    # Awkward numel: process the aligned prefix as a lane-dense slab and the
    # small (<n_cols) tail with a tiny second dispatch.  No full-array
    # jnp.pad / slice round trip.
    n_cols = 2048 if total >= 2048 else 128
    main_len = (total // n_cols) * n_cols
    parts = []
    if main_len:
        y_main = _tanh_2d(flat[:main_len].reshape(main_len // n_cols, n_cols), cfg)
        parts.append(y_main.reshape(-1))
    parts.append(_tanh_small_1d(flat[main_len:], cfg))
    return jnp.concatenate(parts).reshape(orig_shape)


if __name__ == "__main__":
    key = jax.random.PRNGKey(0)
    # Small NCHW-style activation tensor (batch=2, channels=4, 16x16 spatial).
    x = jax.random.normal(key, (2, 4, 16, 16), dtype=jnp.float32)

    y = tanh_forward(x)
    jax.block_until_ready(y)

    # Correctness check against the reference elementwise tanh.
    y_ref = jnp.tanh(x)
    assert y.shape == x.shape and y.dtype == x.dtype
    assert jnp.allclose(y, y_ref, atol=1e-6, rtol=1e-6)

    print("KERNEL_OK")
</pallas_src>

<mosaic_0001>
module attributes {stable_mosaic.version = 11 : i64} {
  func.func @_tanh_kernel(%arg0: i32, %arg1: memref<1x2048xf32, #tpu.memory_space<vmem>>, %arg2: memref<1x2048xf32, #tpu.memory_space<vmem>>) attributes {dimension_semantics = [#tpu.dimension_semantics<parallel>], iteration_bounds = array<i64: 1>, scalar_prefetch = 0 : i64, scratch_operands = 0 : i64, tpu.core_type = #tpu.core_type<tc>, window_params = [{transform_indices = @transform_0, window_bounds = array<i64: 1, 2048>}, {transform_indices = @transform_1, window_bounds = array<i64: 1, 2048>}]} {
    %c0 = arith.constant 0 : index
    %c0_0 = arith.constant 0 : index
    %0 = vector.load %arg1[%c0, %c0_0] : memref<1x2048xf32, #tpu.memory_space<vmem>>, vector<1x2048xf32>
    %1 = math.tanh %0 : vector<1x2048xf32>
    %c0_1 = arith.constant 0 : index
    %c0_2 = arith.constant 0 : index
    %2 = vector.load %arg2[%c0_1, %c0_2] : memref<1x2048xf32, #tpu.memory_space<vmem>>, vector<1x2048xf32>
    tpu.vector_store %arg2[%c0_1, %c0_2], %1 {strides = array<i32>} : memref<1x2048xf32, #tpu.memory_space<vmem>>, vector<1x2048xf32>,
    return
  }
  func.func @transform_0(%arg0: i32) -> (i32, i32) {
    %c0_i32 = arith.constant 0 : i32
    %c0_i32_0 = arith.constant 0 : i32
    return %arg0, %c0_i32 : i32, i32
  }
  func.func @transform_1(%arg0: i32) -> (i32, i32) {
    %c0_i32 = arith.constant 0 : i32
    %c0_i32_0 = arith.constant 0 : i32
    return %arg0, %c0_i32 : i32, i32
  }
}

</mosaic_0001>

<bundles_post_ra>
// kernel: tpu_custom_call.1
= control target key start
LH: loop header
LB: loop body
LE: loop exit
PB: predicated region body
PF: predicated region fallthrough
CT: control target
= control target key end

     0   :  { %6 = vsyncpa [#allocation3], 0  ;;  %s122_s0 = inlined_call_operand.hbm [shape: f32[1,2048], index: 0, kind: input, shape index: {}]   ;;  %s123_s1 = inlined_call_operand.hbm [shape: f32[1,2048], index: 1, kind: output, shape index: {}]  }
   0x1   :  { %7 = vsyncpa [#allocation4], 0  ;;  %s13_s8 = sshll.u32 %s122_s0, 4  ;;  %s104_s9 = smov [#allocation2]   ;;  %s14_s8 = int_to_ptr.hbm [resolvable:$true] %s13_s8 }
   0x2   :  { %s15_s10 = sshll.u32 %s104_s9, 4  ;;  %s16_s10 = int_to_ptr.vmem [resolvable:$true] %s15_s10 }
   0x3   :  { %18 = dma.hbm_to_vmem [thread:$0]  %s14_s8, 256, %s16_s10, [#allocation3]  }
   0x4   :  { %100 = dma.done.wait [#allocation3], 256  }
   0x5   :  { %101 = vsyncadd [#allocation3], 4294967040  ;;  %v23_v0 = vld [vmem:[#allocation2] sm:$0xff]  ;;  %v24_v1 = vld [vmem:[#allocation2 + $0x8] sm:$0xff]  ;;  %s105_s11 = smov [#allocation5]   ;;  %s36_s15 = sshll.u32 %s123_s1, 4  ;;  %s37_s15 = int_to_ptr.hbm [resolvable:$true] %s36_s15 }
   0x6   :  { %48 = vtanh.f32 %v23_v0  ;;  %s34_s12 = sshll.u32 %s105_s11, 4  ;;  %s35_s12 = int_to_ptr.vmem [resolvable:$true] %s34_s12 }
   0x7   :  { %50 = vtanh.f32 %v24_v1 }
   0xc   :  { %v49_v2 = vpop.eup %48 }
   0xd   :  { %v51_v3 = vpop.eup %50  ;;  %27 = vst [vmem:[#allocation5] sm:$0xff] %v49_v2 }
   0xe   :  { %28 = vst [vmem:[#allocation5 + $0x8] sm:$0xff] %v51_v3 }
   0xf   :  { %39 = dma.vmem_to_hbm [thread:$0]  %s35_s12, 256, %s37_s15, [#allocation4]  }
  0x10   :  { %102 = dma.done.wait [#allocation4], 256  }
  0x11   :  { %103 = vsyncadd [#allocation4], 4294967040 }
  0x12   :  { %44 = vsyncpa [#allocation3], 1 }
  0x13   :  { %45 = vsyncpa [#allocation4], 1 }

</bundles_post_ra>
